<compile_context>
chip_gen: v5e
topology: v5e:2x2
jax: 0.10.0
libtpu: 0.0.40
codegen_flags: <defaults>
</compile_context>

<pallas_src>
import functools

import jax
import jax.numpy as jnp
from jax.experimental import pallas as pl
from jax.experimental.pallas import tpu as pltpu

LANES = 128      # vreg lane width
SUBLANES = 8     # vreg sublane height
MAX_TM = 2048    # rows per tile -> 1 MiB per f32 block, 512 KiB per bf16 block


def _mse_kernel(x_ref, y_ref, out_ref, acc_ref, *,
                valid_rows, tm, steps_per_core, need_mask):
    c = pl.program_id(0)   # TensorCore-parallel axis
    i = pl.program_id(1)   # sequential reduction axis (per core)

    @pl.when(i == 0)
    def _():
        acc_ref[...] = jnp.zeros_like(acc_ref)

    # Upcast inside the kernel: bf16 inputs travel HBM->VMEM at half the bytes.
    d = x_ref[...].astype(jnp.float32) - y_ref[...].astype(jnp.float32)
    d2 = d * d

    if need_mask:
        # Intended (unclamped) global row of every sublane in this block; rows at
        # or beyond `valid_rows` are either Pallas OOB garbage or duplicated data
        # from a clamped block index -> zero them out.
        row = jax.lax.broadcasted_iota(jnp.int32, (tm, 1), 0)
        grow = (c * steps_per_core + i) * tm + row
        d2 = jnp.where(grow < valid_rows, d2, 0.0)

    # Fold (tm, 128) -> (8, 128) with plain VPU adds; no cross-lane reduction in
    # the hot loop and better accumulation accuracy than a running scalar.
    acc_ref[...] += jnp.sum(d2.reshape(tm // SUBLANES, SUBLANES, LANES), axis=0)

    @pl.when(i == pl.num_programs(1) - 1)
    def _():
        out_ref[0] = acc_ref[...]


def my_loss(x, y):
    """Mean squared error computed in a Pallas TPU kernel. Returns an f32 scalar."""
    assert x.shape == y.shape, "x and y must have the same shape"
    total_n = x.size

    flat_x = x.reshape(-1)
    flat_y = y.reshape(-1)

    # Pad only for lane alignment (multiple of 128), and only when needed; the
    # zero pad contributes 0 to the sum and we divide by the true element count.
    rem = total_n % LANES
    if rem:
        pad = LANES - rem
        flat_x = jnp.pad(flat_x, (0, pad))
        flat_y = jnp.pad(flat_y, (0, pad))

    x2 = flat_x.reshape(-1, LANES)
    y2 = flat_y.reshape(-1, LANES)
    m = x2.shape[0]                                  # rows actually in HBM

    # Row granularity respects dtype sublane packing (f32:8, bf16:16, int8:32).
    dsize = jnp.dtype(x2.dtype).itemsize
    gran = max(SUBLANES, 32 // dsize)
    tm = min(MAX_TM, max(gran, (m // gran) * gran))  # big tile, <= ~1 MiB/input
    num_blocks = -(-m // tm)                          # cdiv
    nc = 2 if num_blocks >= 2 else 1                  # megacore split (v7x)
    steps = -(-num_blocks // nc)
    need_mask = (nc * steps * tm) > m

    cost = pl.CostEstimate(
        flops=3 * total_n,
        transcendentals=0,
        bytes_accessed=2 * total_n * dsize + nc * SUBLANES * LANES * 4,
    )

    kernel = functools.partial(
        _mse_kernel,
        valid_rows=m, tm=tm, steps_per_core=steps, need_mask=need_mask,
    )

    def in_map(c, i):
        # Clamp so a core's trailing (empty) steps stay in bounds; the in-kernel
        # mask zeroes any rows those steps would otherwise double-count.
        return (jnp.minimum(c * steps + i, num_blocks - 1), 0)

    partials = pl.pallas_call(
        kernel,
        out_shape=jax.ShapeDtypeStruct((nc, SUBLANES, LANES), jnp.float32),
        grid_spec=pltpu.PrefetchScalarGridSpec(
            num_scalar_prefetch=0,
            grid=(nc, steps),
            in_specs=[
                pl.BlockSpec((tm, LANES), in_map),
                pl.BlockSpec((tm, LANES), in_map),
            ],
            out_specs=pl.BlockSpec((1, SUBLANES, LANES), lambda c, i: (c, 0, 0)),
            scratch_shapes=[pltpu.VMEM((SUBLANES, LANES), jnp.float32)],
        ),
        compiler_params=pltpu.CompilerParams(
            dimension_semantics=("parallel", "arbitrary"),
        ),
        cost_estimate=cost,
    )(x2, y2)

    # Tiny final combine (nc * 1024 f32 values) in plain XLA.
    return jnp.sum(partials) / jnp.float32(total_n)


if __name__ == "__main__":
    key = jax.random.PRNGKey(0)
    kx, ky, ka, kb = jax.random.split(key, 4)

    # Small shapes consistent with an LSTM regression loss (prediction vs target).
    x = jax.random.normal(kx, (2, 4, 16, 16), dtype=jnp.float32)
    y = jax.random.normal(ky, (2, 4, 16, 16), dtype=jnp.float32)
    loss = my_loss(x, y)
    jax.block_until_ready(loss)
    ref = jnp.mean((x - y) ** 2)
    assert jnp.allclose(loss, ref, rtol=1e-5, atol=1e-6), (loss, ref)

    # Ragged bf16 case: exercises the no-upcast DMA path, the two-core split and
    # the in-kernel tail mask (no full-array padding beyond lane alignment).
    a = jax.random.normal(ka, (4, 8, 65), dtype=jnp.bfloat16)
    b = jax.random.normal(kb, (4, 8, 65), dtype=jnp.bfloat16)
    loss2 = my_loss(a, b)
    jax.block_until_ready(loss2)
    a32, b32 = a.astype(jnp.float32), b.astype(jnp.float32)
    ref2 = jnp.mean((a32 - b32) ** 2)
    assert jnp.allclose(loss2, ref2, rtol=1e-4, atol=1e-5), (loss2, ref2)

    print("KERNEL_OK")
</pallas_src>

<mosaic_0001>
module attributes {stable_mosaic.version = 11 : i64} {
  func.func @_mse_kernel(%arg0: i32, %arg1: i32, %arg2: memref<16x128xf32, #tpu.memory_space<vmem>>, %arg3: memref<16x128xf32, #tpu.memory_space<vmem>>, %arg4: memref<1x8x128xf32, #tpu.memory_space<vmem>>, %arg5: memref<8x128xf32, #tpu.memory_space<vmem>>) attributes {dimension_semantics = [#tpu.dimension_semantics<parallel>, #tpu.dimension_semantics<arbitrary>], iteration_bounds = array<i64: 1, 1>, scalar_prefetch = 0 : i64, scratch_operands = 1 : i64, tpu.core_type = #tpu.core_type<tc>, window_params = [{transform_indices = @transform_0, window_bounds = array<i64: 16, 128>}, {transform_indices = @transform_1, window_bounds = array<i64: 16, 128>}, {transform_indices = @transform_2, window_bounds = array<i64: 1, 8, 128>}]} {
    %c0_i32 = arith.constant 0 : i32
    %0 = arith.cmpi eq, %arg1, %c0_i32 : i32
    %1 = arith.extui %0 : i1 to i32
    %c0_i32_0 = arith.constant 0 : i32
    %2 = arith.cmpi ne, %1, %c0_i32_0 : i32
    scf.if %2 {
      %cst_10 = arith.constant 0.000000e+00 : f32
      %15 = vector.broadcast %cst_10 : f32 to vector<8x128xf32>
      %c0_11 = arith.constant 0 : index
      %c0_12 = arith.constant 0 : index
      %16 = vector.load %arg5[%c0_11, %c0_12] : memref<8x128xf32, #tpu.memory_space<vmem>>, vector<8x128xf32>
      tpu.vector_store %arg5[%c0_11, %c0_12], %15 {strides = array<i32>} : memref<8x128xf32, #tpu.memory_space<vmem>>, vector<8x128xf32>,
    } else {
    }
    %c0 = arith.constant 0 : index
    %c0_1 = arith.constant 0 : index
    %3 = vector.load %arg2[%c0, %c0_1] : memref<16x128xf32, #tpu.memory_space<vmem>>, vector<16x128xf32>
    %c0_2 = arith.constant 0 : index
    %c0_3 = arith.constant 0 : index
    %4 = vector.load %arg3[%c0_2, %c0_3] : memref<16x128xf32, #tpu.memory_space<vmem>>, vector<16x128xf32>
    %5 = arith.subf %3, %4 : vector<16x128xf32>
    %6 = arith.mulf %5, %5 : vector<16x128xf32>
    %c0_4 = arith.constant 0 : index
    %c0_5 = arith.constant 0 : index
    %7 = vector.load %arg5[%c0_4, %c0_5] : memref<8x128xf32, #tpu.memory_space<vmem>>, vector<8x128xf32>
    %8 = vector.shape_cast %6 : vector<16x128xf32> to vector<2x8x128xf32>
    %cst = arith.constant dense<0.000000e+00> : vector<8x128xf32>
    %9 = vector.multi_reduction <add>, %8, %cst [0] : vector<2x8x128xf32> to vector<8x128xf32>
    %10 = arith.addf %7, %9 : vector<8x128xf32>
    %c0_6 = arith.constant 0 : index
    %c0_7 = arith.constant 0 : index
    %11 = vector.load %arg5[%c0_6, %c0_7] : memref<8x128xf32, #tpu.memory_space<vmem>>, vector<8x128xf32>
    tpu.vector_store %arg5[%c0_6, %c0_7], %10 {strides = array<i32>} : memref<8x128xf32, #tpu.memory_space<vmem>>, vector<8x128xf32>,
    %c0_i32_8 = arith.constant 0 : i32
    %12 = arith.cmpi eq, %arg1, %c0_i32_8 : i32
    %13 = arith.extui %12 : i1 to i32
    %c0_i32_9 = arith.constant 0 : i32
    %14 = arith.cmpi ne, %13, %c0_i32_9 : i32
    scf.if %14 {
      %c0_10 = arith.constant 0 : index
      %c0_11 = arith.constant 0 : index
      %15 = vector.load %arg5[%c0_10, %c0_11] : memref<8x128xf32, #tpu.memory_space<vmem>>, vector<8x128xf32>
      %c0_12 = arith.constant 0 : index
      %c0_13 = arith.constant 0 : index
      %c0_14 = arith.constant 0 : index
      %16 = vector.load %arg4[%c0_12, %c0_13, %c0_14] : memref<1x8x128xf32, #tpu.memory_space<vmem>>, vector<1x8x128xf32>
      %17 = vector.shape_cast %16 : vector<1x8x128xf32> to vector<8x128xf32>
      %18 = vector.shape_cast %15 : vector<8x128xf32> to vector<1x8x128xf32>
      tpu.vector_store %arg4[%c0_12, %c0_13, %c0_14], %18 {strides = array<i32>} : memref<1x8x128xf32, #tpu.memory_space<vmem>>, vector<1x8x128xf32>,
    } else {
    }
    return
  }
  func.func @transform_0(%arg0: i32, %arg1: i32) -> (i32, i32) {
    %c1_i32 = arith.constant 1 : i32
    %0 = arith.muli %arg0, %c1_i32 : i32
    %1 = arith.addi %0, %arg1 : i32
    %c0_i32 = arith.constant 0 : i32
    %2 = arith.minsi %1, %c0_i32 : i32
    %c0_i32_0 = arith.constant 0 : i32
    %c0_i32_1 = arith.constant 0 : i32
    return %2, %c0_i32_0 : i32, i32
  }
  func.func @transform_1(%arg0: i32, %arg1: i32) -> (i32, i32) {
    %c1_i32 = arith.constant 1 : i32
    %0 = arith.muli %arg0, %c1_i32 : i32
    %1 = arith.addi %0, %arg1 : i32
    %c0_i32 = arith.constant 0 : i32
    %2 = arith.minsi %1, %c0_i32 : i32
    %c0_i32_0 = arith.constant 0 : i32
    %c0_i32_1 = arith.constant 0 : i32
    return %2, %c0_i32_0 : i32, i32
  }
  func.func @transform_2(%arg0: i32, %arg1: i32) -> (i32, i32, i32) {
    %c0_i32 = arith.constant 0 : i32
    %c0_i32_0 = arith.constant 0 : i32
    %c0_i32_1 = arith.constant 0 : i32
    return %arg0, %c0_i32, %c0_i32_0 : i32, i32, i32
  }
}

</mosaic_0001>

<bundles_post_ra>
// kernel: tpu_custom_call.1
= control target key start
LH: loop header
LB: loop body
LE: loop exit
PB: predicated region body
PF: predicated region fallthrough
CT: control target
= control target key end

     0   :  { %7 = vsyncpa [#allocation4], 0  ;;  %s220_s0 = inlined_call_operand.hbm [shape: f32[16,128], index: 0, kind: input, shape index: {}]   ;;  %s221_s1 = inlined_call_operand.hbm [shape: f32[16,128], index: 1, kind: input, shape index: {}]   ;;  %s222_s2 = inlined_call_operand.hbm [shape: f32[1,8,128], index: 2, kind: output, shape index: {}]  }
   0x1   :  { %8 = vsyncpa [#allocation7], 0 }
   0x2   :  { %9 = vsyncpa [#allocation5], 0  ;;  %s20_s11 = sshll.u32 %s220_s0, 4  ;;  %s191_s12 = smov [#allocation3]   ;;  %s21_s11 = int_to_ptr.hbm [resolvable:$true] %s20_s11 }
   0x3   :  { %s22_s13 = sshll.u32 %s191_s12, 4  ;;  %s39_s16 = sshll.u32 %s221_s1, 4  ;;  %s23_s13 = int_to_ptr.vmem [resolvable:$true] %s22_s13  ;;  %s40_s16 = int_to_ptr.hbm [resolvable:$true] %s39_s16 }
   0x4   :  { %s192_s17 = smov 128   ;;  %s193_s18 = smov 8  }
   0x5   :  { %28 = dma.hbm_to_vmem [thread:$0]  %s21_s11, 256, %s23_s13, [#allocation4], %s192_s17, %s192_s17, %s193_s18  }
   0x6   :  { %s194_s19 = smov [#allocation6]  }
   0x7   :  { %s41_s20 = sshll.u32 %s194_s19, 4  ;;  %s42_s20 = int_to_ptr.vmem [resolvable:$true] %s41_s20 }
   0x8   :  { %47 = dma.hbm_to_vmem [thread:$0]  %s40_s16, 256, %s42_s20, [#allocation7], %s192_s17, %s192_s17, %s193_s18  }
   0x9   :  { %185 = dma.done.wait [#allocation4], 256  }
   0xa   :  { %186 = vsyncadd [#allocation4], 4294967040 }
   0xb   :  { %187 = dma.done.wait [#allocation7], 256  }
   0xc   :  { %188 = vsyncadd [#allocation7], 4294967040  ;;  %v69_v0 = vld [vmem:[#allocation3] sm:$0xff]  ;;  %v70_v1 = vld [vmem:[#allocation3 + $0x8] sm:$0xff]  ;;  %s195_s0 = smov [#allocation8]   ;;  %s93_s23 = sshll.u32 %s222_s2, 4  ;;  %s94_s23 = int_to_ptr.hbm [resolvable:$true] %s93_s23 }
   0xd   :  { %v71_v2 = vld [vmem:[#allocation6] sm:$0xff]  ;;  %v72_v3 = vld [vmem:[#allocation6 + $0x8] sm:$0xff]  ;;  %s91_s1 = sshll.u32 %s195_s0, 4  ;;  %s92_s1 = int_to_ptr.vmem [resolvable:$true] %s91_s1 }
   0xe   :  { %v73_v4 = vsub.f32 %v69_v0, %v71_v2  ;;  %v74_v5 = vsub.f32 %v70_v1, %v72_v3 }
  0x10   :  { %v75_v6 = vmul.f32 %v73_v4, %v73_v4  ;;  %v76_v7 = vmul.f32 %v74_v5, %v74_v5 }
  0x12   :  { %v78_v8 = vadd.f32 %v76_v7, %v75_v6 }
  0x14   :  { %85 = vst [vmem:[#allocation8] sm:$0xff] %v78_v8 }
  0x15   :  { %96 = dma.vmem_to_hbm [thread:$0]  %s92_s1, 128, %s94_s23, [#allocation5]  }
  0x16   :  { %189 = dma.done.wait [#allocation5], 128  }
  0x17   :  { %190 = vsyncadd [#allocation5], 4294967168 }
  0x18   :  { %101 = vsyncpa [#allocation4], 1 }
  0x19   :  { %102 = vsyncpa [#allocation7], 1 }
  0x1a   :  { %103 = vsyncpa [#allocation5], 1 }

</bundles_post_ra>
